<compile_context>
chip_gen: v7x
topology: tpu7x:2x2x1
jax: 0.10.0
libtpu: 0.0.40
codegen_flags: <defaults>
</compile_context>

<pallas_src>
import math

import jax
import jax.numpy as jnp
from jax.experimental import pallas as pl
from jax.experimental.pallas import tpu as pltpu


def dqn_kernel(x_ref, w1_ref, b1_ref, w2_ref, b2_ref, o_ref):
    # hidden = relu(x @ W1 + b1)   -- bf16 operands, f32 accumulate
    h = jnp.dot(x_ref[...], w1_ref[...], preferred_element_type=jnp.float32)
    h = jnp.maximum(h + b1_ref[...], 0.0)          # b1_ref (1, 64) broadcasts over rows
    # out = hidden @ W2 + b2       -- cast hidden back to bf16 for the MXU
    out = jnp.dot(h.astype(jnp.bfloat16), w2_ref[...],
                  preferred_element_type=jnp.float32)
    out = out + b2_ref[...]                        # b2_ref (1, action_dim)
    o_ref[...] = out.astype(o_ref.dtype)


def _round_up(n, m):
    return ((n + m - 1) // m) * m


def dqn_forward(x, w1, b1, w2, b2, *, block_batch=1024):
    """x: (batch, obs_dim) f32; w1: (obs_dim, 64); b1: (1, 64);
    w2: (64, action_dim); b2: (1, action_dim).  Returns (batch, action_dim) f32."""
    batch, obs_dim = x.shape
    hidden = w1.shape[1]
    action_dim = w2.shape[1]

    # bf16 operands for the MXU / halved HBM traffic on x; biases stay f32.
    xb = x.astype(jnp.bfloat16)
    w1b = w1.astype(jnp.bfloat16)
    w2b = w2.astype(jnp.bfloat16)
    b1f = b1.astype(jnp.float32)
    b2f = b2.astype(jnp.float32)

    # Batch tile: at most `block_batch` rows, multiple of 8 (sublane), and pad
    # the batch so the grid divides evenly.  At block_batch=1024 an x tile is
    # only 32 KiB of bf16 -- trivially within VMEM on v5e/v6e/v7x.
    tb = min(block_batch, _round_up(batch, 8))
    padded_batch = _round_up(batch, tb)
    if padded_batch != batch:
        xb = jnp.pad(xb, ((0, padded_batch - batch), (0, 0)))

    grid = (padded_batch // tb,)

    out = pl.pallas_call(
        dqn_kernel,
        out_shape=jax.ShapeDtypeStruct((padded_batch, action_dim), jnp.float32),
        grid_spec=pltpu.PrefetchScalarGridSpec(
            num_scalar_prefetch=0,
            grid=grid,
            in_specs=[
                pl.BlockSpec((tb, obs_dim), lambda i: (i, 0)),        # x: tiled over batch
                pl.BlockSpec((obs_dim, hidden), lambda i: (0, 0)),    # W1: resident
                pl.BlockSpec((1, hidden), lambda i: (0, 0)),          # b1: resident
                pl.BlockSpec((hidden, action_dim), lambda i: (0, 0)), # W2: resident
                pl.BlockSpec((1, action_dim), lambda i: (0, 0)),      # b2: resident
            ],
            out_specs=pl.BlockSpec((tb, action_dim), lambda i: (i, 0)),
        ),
        compiler_params=pltpu.CompilerParams(
            dimension_semantics=("parallel",),   # both TCs on v7x megacore
        ),
    )(xb, w1b, b1f, w2b, b2f)

    # TODO(synk): output last dim (action_dim=4) triggers masked vst stores; a
    # lane-dense (128-wide) padded output would shave single-digit % -- skipped
    # to keep the module's output shape exact.
    return out[:batch]


def init_linear(key, fan_in, fan_out):
    # Mimic torch.nn.Linear default init: U(-1/sqrt(fan_in), 1/sqrt(fan_in))
    kw, kb = jax.random.split(key)
    bound = 1.0 / math.sqrt(fan_in)
    w = jax.random.uniform(kw, (fan_in, fan_out), jnp.float32, -bound, bound)
    b = jax.random.uniform(kb, (1, fan_out), jnp.float32, -bound, bound)
    return w, b


def _ref_forward(x, w1, b1, w2, b2):
    return jnp.maximum(x @ w1 + b1, 0.0) @ w2 + b2


if __name__ == "__main__":
    key = jax.random.PRNGKey(0)
    k_x, k_l1, k_l2, k_big = jax.random.split(key, 4)

    obs_dim, hidden, action_dim = 16, 64, 4
    w1, b1 = init_linear(k_l1, obs_dim, hidden)
    w2, b2 = init_linear(k_l2, hidden, action_dim)

    # Small check (batch=8): single grid step.
    x_small = jax.random.normal(k_x, (8, obs_dim), jnp.float32)
    out_small = jax.block_until_ready(dqn_forward(x_small, w1, b1, w2, b2))
    ref_small = _ref_forward(x_small, w1, b1, w2, b2)
    assert out_small.shape == (8, action_dim)
    assert jnp.allclose(out_small, ref_small, atol=2e-2, rtol=2e-2)

    # Larger check exercising the batch grid + padding path (batch not a
    # multiple of the tile).
    x_big = jax.random.normal(k_big, (1000, obs_dim), jnp.float32)
    out_big = jax.block_until_ready(
        dqn_forward(x_big, w1, b1, w2, b2, block_batch=256))
    ref_big = _ref_forward(x_big, w1, b1, w2, b2)
    assert out_big.shape == (1000, action_dim)
    assert jnp.allclose(out_big, ref_big, atol=2e-2, rtol=2e-2)

    print("KERNEL_OK")
</pallas_src>

<mosaic_0001>
module attributes {stable_mosaic.version = 11 : i64} {
  func.func @dqn_kernel(%arg0: i32, %arg1: memref<8x16xbf16, #tpu.memory_space<vmem>>, %arg2: memref<16x64xbf16, #tpu.memory_space<vmem>>, %arg3: memref<1x64xf32, #tpu.memory_space<vmem>>, %arg4: memref<64x4xbf16, #tpu.memory_space<vmem>>, %arg5: memref<1x4xf32, #tpu.memory_space<vmem>>, %arg6: memref<8x4xf32, #tpu.memory_space<vmem>>) attributes {dimension_semantics = [#tpu.dimension_semantics<parallel>], iteration_bounds = array<i64: 1>, scalar_prefetch = 0 : i64, scratch_operands = 0 : i64, tpu.core_type = #tpu.core_type<tc>, window_params = [{transform_indices = @transform_0, window_bounds = array<i64: 8, 16>}, {pipeline_mode = #tpu.pipeline_mode<synchronous>, transform_indices = @transform_1, window_bounds = array<i64: 16, 64>}, {pipeline_mode = #tpu.pipeline_mode<synchronous>, transform_indices = @transform_2, window_bounds = array<i64: 1, 64>}, {pipeline_mode = #tpu.pipeline_mode<synchronous>, transform_indices = @transform_3, window_bounds = array<i64: 64, 4>}, {pipeline_mode = #tpu.pipeline_mode<synchronous>, transform_indices = @transform_4, window_bounds = array<i64: 1, 4>}, {transform_indices = @transform_5, window_bounds = array<i64: 8, 4>}]} {
    %c0 = arith.constant 0 : index
    %c0_0 = arith.constant 0 : index
    %0 = vector.load %arg1[%c0, %c0_0] : memref<8x16xbf16, #tpu.memory_space<vmem>>, vector<8x16xbf16>
    %c0_1 = arith.constant 0 : index
    %c0_2 = arith.constant 0 : index
    %1 = vector.load %arg2[%c0_1, %c0_2] : memref<16x64xbf16, #tpu.memory_space<vmem>>, vector<16x64xbf16>
    %cst = arith.constant dense<0.000000e+00> : vector<8x64xf32>
    %2 = tpu.matmul %0, %1, %cst {dimension_numbers = #tpu.dot_dimension_numbers<[1], [0], [0], [1], [0, 0, 1, 1], [], []>} : vector<8x16xbf16>, vector<16x64xbf16>, vector<8x64xf32> -> vector<8x64xf32>
    %c0_3 = arith.constant 0 : index
    %c0_4 = arith.constant 0 : index
    %3 = vector.load %arg3[%c0_3, %c0_4] : memref<1x64xf32, #tpu.memory_space<vmem>>, vector<1x64xf32>
    %4 = vector.broadcast %3 : vector<1x64xf32> to vector<8x64xf32>
    %5 = arith.addf %2, %4 : vector<8x64xf32>
    %cst_5 = arith.constant 0.000000e+00 : f32
    %6 = vector.broadcast %cst_5 : f32 to vector<8x64xf32>
    %7 = arith.maximumf %5, %6 : vector<8x64xf32>
    %8 = arith.truncf %7 : vector<8x64xf32> to vector<8x64xbf16>
    %c0_6 = arith.constant 0 : index
    %c0_7 = arith.constant 0 : index
    %9 = vector.load %arg4[%c0_6, %c0_7] : memref<64x4xbf16, #tpu.memory_space<vmem>>, vector<64x4xbf16>
    %cst_8 = arith.constant dense<0.000000e+00> : vector<8x4xf32>
    %10 = tpu.matmul %8, %9, %cst_8 {dimension_numbers = #tpu.dot_dimension_numbers<[1], [0], [0], [1], [0, 0, 1, 1], [], []>} : vector<8x64xbf16>, vector<64x4xbf16>, vector<8x4xf32> -> vector<8x4xf32>
    %c0_9 = arith.constant 0 : index
    %c0_10 = arith.constant 0 : index
    %11 = vector.load %arg5[%c0_9, %c0_10] : memref<1x4xf32, #tpu.memory_space<vmem>>, vector<1x4xf32>
    %12 = vector.broadcast %11 : vector<1x4xf32> to vector<8x4xf32>
    %13 = arith.addf %10, %12 : vector<8x4xf32>
    %c0_11 = arith.constant 0 : index
    %c0_12 = arith.constant 0 : index
    %14 = vector.load %arg6[%c0_11, %c0_12] : memref<8x4xf32, #tpu.memory_space<vmem>>, vector<8x4xf32>
    tpu.vector_store %arg6[%c0_11, %c0_12], %13 {strides = array<i32>} : memref<8x4xf32, #tpu.memory_space<vmem>>, vector<8x4xf32>,
    return
  }
  func.func @transform_0(%arg0: i32) -> (i32, i32) {
    %c0_i32 = arith.constant 0 : i32
    %c0_i32_0 = arith.constant 0 : i32
    return %arg0, %c0_i32 : i32, i32
  }
  func.func @transform_1(%arg0: i32) -> (i32, i32) {
    %c0_i32 = arith.constant 0 : i32
    %c0_i32_0 = arith.constant 0 : i32
    %c0_i32_1 = arith.constant 0 : i32
    return %c0_i32, %c0_i32_0 : i32, i32
  }
  func.func @transform_2(%arg0: i32) -> (i32, i32) {
    %c0_i32 = arith.constant 0 : i32
    %c0_i32_0 = arith.constant 0 : i32
    %c0_i32_1 = arith.constant 0 : i32
    return %c0_i32, %c0_i32_0 : i32, i32
  }
  func.func @transform_3(%arg0: i32) -> (i32, i32) {
    %c0_i32 = arith.constant 0 : i32
    %c0_i32_0 = arith.constant 0 : i32
    %c0_i32_1 = arith.constant 0 : i32
    return %c0_i32, %c0_i32_0 : i32, i32
  }
  func.func @transform_4(%arg0: i32) -> (i32, i32) {
    %c0_i32 = arith.constant 0 : i32
    %c0_i32_0 = arith.constant 0 : i32
    %c0_i32_1 = arith.constant 0 : i32
    return %c0_i32, %c0_i32_0 : i32, i32
  }
  func.func @transform_5(%arg0: i32) -> (i32, i32) {
    %c0_i32 = arith.constant 0 : i32
    %c0_i32_0 = arith.constant 0 : i32
    return %arg0, %c0_i32 : i32, i32
  }
}

</mosaic_0001>

<bundles_post_ra>
// kernel: tpu_custom_call.1
= control target key start
LH: loop header
LB: loop body
LE: loop exit
PB: predicated region body
PF: predicated region fallthrough
CT: control target
= control target key end

     0   :  { %v213_v0 = vmov 0.0   ;;  %vm214_vm0 = vmmov 0   ;;  %vm37_vm1 = vcmask 130048   ;;  %vm122_vm2 = vcmask 523264   ;;  %s272_s1 = inlined_call_operand.vmem [shape: bf16[16,64], index: 1, kind: input, shape index: {}]   ;;  %s273_s0 = inlined_call_operand.vmem [shape: bf16[8,16], index: 0, kind: input, shape index: {}]   ;;  %s274_s3 = inlined_call_operand.vmem [shape: bf16[64,4], index: 3, kind: input, shape index: {}]   ;;  %s275_s2 = inlined_call_operand.vmem [shape: f32[1,64], index: 2, kind: input, shape index: {}]   ;;  %s276_s4 = inlined_call_operand.vmem [shape: f32[1,4], index: 4, kind: input, shape index: {}]   ;;  %s277_s5 = inlined_call_operand.vmem [shape: f32[8,4], index: 5, kind: output, shape index: {}]  }
   0x1   :  { %188 = vmatprep.subr.bf16.mxu0 %v213_v0  ;;  %v208_v1 = vld [vmem:[%s272_s1] sm:$0xff]   ;;  %190 = vmatprep.mubr.msk.bf16.mxu0 %vm214_vm0, %v213_v0  ;;  %v210_v4 = vld [vmem:[%s274_s3 + $0x8] sm:$0xff]   ;;  %v211_v5 = vld [vmem:[%s274_s3 + $0x10] sm:$0xff]   ;;  %vm166_vm3 = vcmask 31744  }
   0x2   :  { %v21_v2 = vld [vmem:[%s273_s0] sm:$0xf]  ;;  %194 = vmatprep.subr.bf16.mxu1 %v213_v0  ;;  %202 = vmatprep.mubr.msk.bf16.mxu1 %vm214_vm0, %v213_v0  ;;  %v212_v6 = vld [vmem:[%s274_s3 + $0x18] sm:$0xff]  }
   0x3   :  { %189 = vmatpush3.bf16.msra.mxu0 %v208_v1  ;;  %v209_v3 = vld [vmem:[%s274_s3] sm:$0xff]  }
   0x4   :  { %195 = vmatpush3.bf16.msra.mxu1 %v209_v3  ;;  %v172_v7 = vld [vmem:[%s275_s2] ss:$0 sm:$0xff] }
   0x5   :  { %196 = vmatprep.subr.bf16.mxu1 %v213_v0  ;;  %v175_v15 = vld [vmem:[%s276_s4] ss:$0 sm:$0xff] }
   0x6   :  { %191 = vmatmul.mubr.msk.bf16.vlgmr.msra.gmra.mrb[0].mxu0 %vm37_vm1, %v21_v2 }
   0x8   :  { %197 = vmatpush3.bf16.msra.mxu1 %v210_v4 }
   0x9   :  { %198 = vmatprep.subr.bf16.mxu1 %v213_v0 }
   0xc   :  { %199 = vmatpush3.bf16.msra.mxu1 %v211_v5 }
   0xd   :  { %200 = vmatprep.subr.bf16.mxu1 %v213_v0 }
  0x10   :  { %201 = vmatpush3.bf16.msra.mxu1 %v212_v6 }
  0xd9   :  { %v75_v8 = vpop.f32.mrb[0].mxu0 }
  0xda   :  { %v76_v9 = vadd.f32 %v172_v7, %v75_v8  ;;  %v192_v10 = vpop.f32.mrb[1].mxu0 }
  0xdb   :  { %v78_v11 = vpop.f32.mrb[2].mxu0 }
  0xdc   :  { %v81_v12 = vmax.f32 %v76_v9, 0.0  ;;  %v193_v13 = vpop.f32.mrb[3].mxu0 }
  0xde   :  { %v82_v14 = vpack.c.bf16 %v81_v12, %v81_v12 }
  0xe0   :  { %203 = vmatmul.mubr.msk.bf16.vlgmr.msra.gmra.mrb[0].mxu1 %vm122_vm2, %v82_v14 }
 0x1b3   :  { %v160_v16 = vpop.f32.mrb[0].mxu1 }
 0x1b4   :  { %v161_v17 = vadd.f32 %v175_v15, %v160_v16  ;;  %v204_v18 = vpop.f32.mrb[1].mxu1 }
 0x1b5   :  { %v163_v19 = vpop.f32.mrb[2].mxu1 }
 0x1b6   :  { %167 = vst.msk [vmem:[%s277_s5] sm:$0xff] %vm166_vm3, %v161_v17  ;;  %v205_v20 = vpop.f32.mrb[3].mxu1 }

</bundles_post_ra>
